<compile_context>
chip_gen: v5e
topology: v5e:2x2
jax: 0.10.0
libtpu: 0.0.40
codegen_flags: <defaults>
</compile_context>

<pallas_src>
import jax
import jax.numpy as jnp
from jax.experimental import pallas as pl
from jax.experimental.pallas import tpu as pltpu

N_VOCAB = 6
EMB_DIM = 2


def _contextnet_kernel(x_ref, c_ref, w2t_ref, wcht_ref, ftT_ref, out_ref):
    x = x_ref[...]                      # (3, tile) f32: rows = [last_time, last_onset, idx]
    c = c_ref[...]                      # (H, 4)  columns: [w1_row0 | w1_row1 | b1 | b2]
    t = x[0:1, :]                       # (1, tile)
    o = x[1:2, :]                       # (1, tile)
    idx = x[2:3, :]                     # (1, tile)  integer-valued f32 in [0, 6)

    # Linear(2, H) + ReLU as two VPU broadcast-FMAs (a K=2 contraction would waste the MXU).
    h1 = jnp.maximum(c[:, 0:1] * t + c[:, 1:2] * o + c[:, 2:3], 0.0)          # (H, tile) f32

    # Linear(H, H) + ReLU: single-pass bf16 MXU, f32 accumulate; bias + ReLU in f32.
    h2 = jnp.dot(w2t_ref[...], h1.astype(jnp.bfloat16),
                 preferred_element_type=jnp.float32) + c[:, 3:4]
    h2 = jnp.maximum(h2, 0.0)                                                 # (H, tile) f32

    # concat_net, hidden half: (out_dim, H) @ (H, tile) on the MXU (bf16, f32 acc).
    out = jnp.dot(wcht_ref[...], h2.astype(jnp.bfloat16),
                  preferred_element_type=jnp.float32)                         # (out_dim, tile)

    # Embedding + concat_net emb-half + bias, fused into ftT (out_dim, 6) and gathered with
    # a 6-way VPU select: broadcast idx once, tree-accumulate into a separate emb term.
    ftT = ftT_ref[...]                                                        # (out_dim, 6) f32
    idx_b = jnp.broadcast_to(idx, out.shape)                                  # (out_dim, tile)
    sel = lambda v: jnp.where(idx_b == float(v), ftT[:, v:v + 1], 0.0)
    emb = (sel(0) + sel(1)) + (sel(2) + sel(3)) + (sel(4) + sel(5))

    out_ref[...] = (out + emb).astype(out_ref.dtype)


def context_net_joint(last, last_time, last_onset, params, *, tile_n=None):
    """last: (B,T,P) int ; last_time, last_onset: (B,T,P,1) f32 -> (B,T,out_dim,P) f32."""
    B, T, P = last.shape
    out_dim = params["wc"].shape[1]
    N = B * T * P

    if tile_n is None:
        # Lane-aligned tiles of 128..4096, aiming for >= 4 grid steps so the BlockSpec
        # pipeline has a steady state (prefetch i+1 / writeback i-1 overlap compute i).
        tile_n = min(4096, max(128, pl.cdiv(pl.cdiv(N, 4), 128) * 128))
    grid_steps = pl.cdiv(N, tile_n)
    if grid_steps > 1 and grid_steps % 2 == 1:
        grid_steps += 1            # even grid: balanced split across v7x's two TensorCores
    N_pad = grid_steps * tile_n

    # One packed feature-major input: rows = [last_time, last_onset, idx-as-f32].
    # Single wrapper copy, single DMA stream per grid step.  Reshapes are metadata-only.
    x = jnp.concatenate(
        [last_time.reshape(1, N).astype(jnp.float32),
         last_onset.reshape(1, N).astype(jnp.float32),
         last.reshape(1, N).astype(jnp.float32)], axis=0)                     # (3, N)
    if N_pad != N:
        # Padded tail lanes compute garbage but are sliced off below.
        x = jnp.pad(x, ((0, 0), (0, N_pad - N)))

    w1, b1 = params["w1"], params["b1"]                  # (2, H), (H,)
    w2, b2 = params["w2"], params["b2"]                  # (H, H), (H,)
    wc, bc = params["wc"], params["bc"]                  # (H+2, out_dim), (out_dim,)

    # Packed per-hidden constants: [w1_row0 | w1_row1 | b1 | b2]  -> (H, 4), f32 (VPU side).
    consts = jnp.stack([w1[0], w1[1], b1, b2], axis=1).astype(jnp.float32)
    # MXU operands in bf16 (single-pass matmul); accumulation stays f32 in-kernel.
    w2t = w2.T.astype(jnp.bfloat16)                      # (H, H)
    wcht = wc[EMB_DIM:].T.astype(jnp.bfloat16)           # (out_dim, H)
    # Fused table: emb @ wc[:2] + bc, transposed -> (out_dim, 6), f32 (VPU side).
    ftT = (params["emb"] @ wc[:EMB_DIM] + bc).T.astype(jnp.float32)

    row_spec = lambda r: pl.BlockSpec((r, tile_n), lambda i: (0, i))
    full_spec = lambda shape: pl.BlockSpec(shape, lambda i: (0, 0))

    out_flat = pl.pallas_call(
        _contextnet_kernel,
        out_shape=jax.ShapeDtypeStruct((out_dim, N_pad), jnp.float32),
        grid_spec=pl.GridSpec(
            grid=(grid_steps,),
            in_specs=[
                row_spec(3),                 # packed [last_time, last_onset, idx]
                full_spec(consts.shape),     # packed w1/b1/b2
                full_spec(w2t.shape),        # bf16
                full_spec(wcht.shape),       # bf16
                full_spec(ftT.shape),
            ],
            out_specs=row_spec(out_dim),
        ),
        compiler_params=pltpu.CompilerParams(dimension_semantics=("parallel",)),
    )(x, consts, w2t, wcht, ftT)

    out = out_flat[:, :N].reshape(out_dim, B, T, P)
    # PyTorch output layout: (B, T, out_dim, P)  (== .permute(0, 1, 3, 2)).
    # TODO(synk): defer/fuse this permute into the consumer to save an HBM round-trip.
    return jnp.transpose(out, (1, 2, 0, 3))


def init_params(key, n_hidden=32, out_dim=4):
    ks = jax.random.split(key, 7)
    u = lambda k, shape, bound: jax.random.uniform(k, shape, jnp.float32, -bound, bound)
    return {
        "emb": jax.random.normal(ks[0], (N_VOCAB, EMB_DIM), jnp.float32),
        "w1": u(ks[1], (2, n_hidden), 1.0 / 2 ** 0.5),
        "b1": u(ks[2], (n_hidden,), 1.0 / 2 ** 0.5),
        "w2": u(ks[3], (n_hidden, n_hidden), 1.0 / n_hidden ** 0.5),
        "b2": u(ks[4], (n_hidden,), 1.0 / n_hidden ** 0.5),
        "wc": u(ks[5], (n_hidden + EMB_DIM, out_dim), 1.0 / (n_hidden + EMB_DIM) ** 0.5),
        "bc": u(ks[6], (out_dim,), 1.0 / (n_hidden + EMB_DIM) ** 0.5),
    }


def reference(last, last_time, last_onset, params):
    x2 = jnp.concatenate([last_time, last_onset], axis=-1)
    h = jnp.maximum(x2 @ params["w1"] + params["b1"], 0.0)
    h = jnp.maximum(h @ params["w2"] + params["b2"], 0.0)
    e = params["emb"][last]
    cat = jnp.concatenate([e, h], axis=-1)
    out = cat @ params["wc"] + params["bc"]
    return jnp.transpose(out, (0, 1, 3, 2))


if __name__ == "__main__":
    B, T, P = 2, 8, 16
    n_hidden, out_dim = 32, 4

    key = jax.random.PRNGKey(0)
    k_params, k_idx, k_t, k_o = jax.random.split(key, 4)
    params = init_params(k_params, n_hidden=n_hidden, out_dim=out_dim)

    last = jax.random.randint(k_idx, (B, T, P), 0, N_VOCAB, jnp.int32)
    last_time = jax.random.normal(k_t, (B, T, P, 1), jnp.float32)
    last_onset = jax.random.normal(k_o, (B, T, P, 1), jnp.float32)

    fn = jax.jit(lambda l, lt, lo: context_net_joint(l, lt, lo, params))
    out = jax.block_until_ready(fn(last, last_time, last_onset))

    ref = reference(last, last_time, last_onset, params)
    assert out.shape == (B, T, out_dim, P), out.shape
    # bf16 MXU operands (f32 accumulate) -> relax the f32 reference tolerance.
    assert jnp.allclose(out, ref, atol=5e-2, rtol=5e-2), (
        "mismatch vs reference, max abs err = %s" % jnp.max(jnp.abs(out - ref)))
    print("KERNEL_OK")
</pallas_src>

<mosaic_0001>
module attributes {stable_mosaic.version = 11 : i64} {
  func.func @_contextnet_kernel(%arg0: i32, %arg1: memref<3x128xf32, #tpu.memory_space<vmem>>, %arg2: memref<32x4xf32, #tpu.memory_space<vmem>>, %arg3: memref<32x32xbf16, #tpu.memory_space<vmem>>, %arg4: memref<4x32xbf16, #tpu.memory_space<vmem>>, %arg5: memref<4x6xf32, #tpu.memory_space<vmem>>, %arg6: memref<4x128xf32, #tpu.memory_space<vmem>>) attributes {dimension_semantics = [#tpu.dimension_semantics<parallel>], iteration_bounds = array<i64: 2>, scalar_prefetch = 0 : i64, scratch_operands = 0 : i64, tpu.core_type = #tpu.core_type<tc>, window_params = [{transform_indices = @transform_0, window_bounds = array<i64: 3, 128>}, {pipeline_mode = #tpu.pipeline_mode<synchronous>, transform_indices = @transform_1, window_bounds = array<i64: 32, 4>}, {pipeline_mode = #tpu.pipeline_mode<synchronous>, transform_indices = @transform_2, window_bounds = array<i64: 32, 32>}, {pipeline_mode = #tpu.pipeline_mode<synchronous>, transform_indices = @transform_3, window_bounds = array<i64: 4, 32>}, {pipeline_mode = #tpu.pipeline_mode<synchronous>, transform_indices = @transform_4, window_bounds = array<i64: 4, 6>}, {transform_indices = @transform_5, window_bounds = array<i64: 4, 128>}]} {
    %c0 = arith.constant 0 : index
    %c0_0 = arith.constant 0 : index
    %0 = vector.load %arg1[%c0, %c0_0] : memref<3x128xf32, #tpu.memory_space<vmem>>, vector<3x128xf32>
    %c0_1 = arith.constant 0 : index
    %c0_2 = arith.constant 0 : index
    %1 = vector.load %arg2[%c0_1, %c0_2] : memref<32x4xf32, #tpu.memory_space<vmem>>, vector<32x4xf32>
    %2 = vector.extract_strided_slice %0 {offsets = [0, 0], sizes = [1, 128], strides = [1, 1]} : vector<3x128xf32> to vector<1x128xf32>
    %3 = vector.extract_strided_slice %0 {offsets = [1, 0], sizes = [1, 128], strides = [1, 1]} : vector<3x128xf32> to vector<1x128xf32>
    %4 = vector.extract_strided_slice %0 {offsets = [2, 0], sizes = [1, 128], strides = [1, 1]} : vector<3x128xf32> to vector<1x128xf32>
    %5 = vector.extract_strided_slice %1 {offsets = [0, 0], sizes = [32, 1], strides = [1, 1]} : vector<32x4xf32> to vector<32x1xf32>
    %6 = vector.broadcast %5 : vector<32x1xf32> to vector<32x128xf32>
    %7 = vector.broadcast %2 : vector<1x128xf32> to vector<32x128xf32>
    %8 = arith.mulf %6, %7 : vector<32x128xf32>
    %9 = vector.extract_strided_slice %1 {offsets = [0, 1], sizes = [32, 1], strides = [1, 1]} : vector<32x4xf32> to vector<32x1xf32>
    %10 = vector.broadcast %9 : vector<32x1xf32> to vector<32x128xf32>
    %11 = vector.broadcast %3 : vector<1x128xf32> to vector<32x128xf32>
    %12 = arith.mulf %10, %11 : vector<32x128xf32>
    %13 = arith.addf %8, %12 : vector<32x128xf32>
    %14 = vector.extract_strided_slice %1 {offsets = [0, 2], sizes = [32, 1], strides = [1, 1]} : vector<32x4xf32> to vector<32x1xf32>
    %15 = vector.broadcast %14 : vector<32x1xf32> to vector<32x128xf32>
    %16 = arith.addf %13, %15 : vector<32x128xf32>
    %cst = arith.constant 0.000000e+00 : f32
    %17 = vector.broadcast %cst : f32 to vector<32x128xf32>
    %18 = arith.maximumf %16, %17 : vector<32x128xf32>
    %c0_3 = arith.constant 0 : index
    %c0_4 = arith.constant 0 : index
    %19 = vector.load %arg3[%c0_3, %c0_4] : memref<32x32xbf16, #tpu.memory_space<vmem>>, vector<32x32xbf16>
    %20 = arith.truncf %18 : vector<32x128xf32> to vector<32x128xbf16>
    %cst_5 = arith.constant dense<0.000000e+00> : vector<32x128xf32>
    %21 = tpu.matmul %19, %20, %cst_5 {dimension_numbers = #tpu.dot_dimension_numbers<[1], [0], [0], [1], [0, 0, 1, 1], [], []>} : vector<32x32xbf16>, vector<32x128xbf16>, vector<32x128xf32> -> vector<32x128xf32>
    %22 = vector.extract_strided_slice %1 {offsets = [0, 3], sizes = [32, 1], strides = [1, 1]} : vector<32x4xf32> to vector<32x1xf32>
    %23 = vector.broadcast %22 : vector<32x1xf32> to vector<32x128xf32>
    %24 = arith.addf %21, %23 : vector<32x128xf32>
    %cst_6 = arith.constant 0.000000e+00 : f32
    %25 = vector.broadcast %cst_6 : f32 to vector<32x128xf32>
    %26 = arith.maximumf %24, %25 : vector<32x128xf32>
    %c0_7 = arith.constant 0 : index
    %c0_8 = arith.constant 0 : index
    %27 = vector.load %arg4[%c0_7, %c0_8] : memref<4x32xbf16, #tpu.memory_space<vmem>>, vector<4x32xbf16>
    %28 = arith.truncf %26 : vector<32x128xf32> to vector<32x128xbf16>
    %cst_9 = arith.constant dense<0.000000e+00> : vector<4x128xf32>
    %29 = tpu.matmul %27, %28, %cst_9 {dimension_numbers = #tpu.dot_dimension_numbers<[1], [0], [0], [1], [0, 0, 1, 1], [], []>} : vector<4x32xbf16>, vector<32x128xbf16>, vector<4x128xf32> -> vector<4x128xf32>
    %c0_10 = arith.constant 0 : index
    %c0_11 = arith.constant 0 : index
    %30 = vector.load %arg5[%c0_10, %c0_11] : memref<4x6xf32, #tpu.memory_space<vmem>>, vector<4x6xf32>
    %31 = vector.shape_cast %4 : vector<1x128xf32> to vector<1x128xf32>
    %32 = vector.broadcast %31 : vector<1x128xf32> to vector<4x128xf32>
    %cst_12 = arith.constant 0.000000e+00 : f32
    %33 = vector.broadcast %cst_12 : f32 to vector<4x128xf32>
    %34 = arith.cmpf oeq, %32, %33 : vector<4x128xf32>
    %35 = vector.extract_strided_slice %30 {offsets = [0, 0], sizes = [4, 1], strides = [1, 1]} : vector<4x6xf32> to vector<4x1xf32>
    %cst_13 = arith.constant 0.000000e+00 : f32
    %36 = vector.shape_cast %35 : vector<4x1xf32> to vector<4x1xf32>
    %37 = vector.broadcast %36 : vector<4x1xf32> to vector<4x128xf32>
    %38 = vector.broadcast %cst_13 : f32 to vector<4x128xf32>
    %39 = arith.select %34, %37, %38 : vector<4x128xi1>, vector<4x128xf32>
    %cst_14 = arith.constant 1.000000e+00 : f32
    %40 = vector.broadcast %cst_14 : f32 to vector<4x128xf32>
    %41 = arith.cmpf oeq, %32, %40 : vector<4x128xf32>
    %42 = vector.extract_strided_slice %30 {offsets = [0, 1], sizes = [4, 1], strides = [1, 1]} : vector<4x6xf32> to vector<4x1xf32>
    %cst_15 = arith.constant 0.000000e+00 : f32
    %43 = vector.shape_cast %42 : vector<4x1xf32> to vector<4x1xf32>
    %44 = vector.broadcast %43 : vector<4x1xf32> to vector<4x128xf32>
    %45 = vector.broadcast %cst_15 : f32 to vector<4x128xf32>
    %46 = arith.select %41, %44, %45 : vector<4x128xi1>, vector<4x128xf32>
    %47 = arith.addf %39, %46 : vector<4x128xf32>
    %cst_16 = arith.constant 2.000000e+00 : f32
    %48 = vector.broadcast %cst_16 : f32 to vector<4x128xf32>
    %49 = arith.cmpf oeq, %32, %48 : vector<4x128xf32>
    %50 = vector.extract_strided_slice %30 {offsets = [0, 2], sizes = [4, 1], strides = [1, 1]} : vector<4x6xf32> to vector<4x1xf32>
    %cst_17 = arith.constant 0.000000e+00 : f32
    %51 = vector.shape_cast %50 : vector<4x1xf32> to vector<4x1xf32>
    %52 = vector.broadcast %51 : vector<4x1xf32> to vector<4x128xf32>
    %53 = vector.broadcast %cst_17 : f32 to vector<4x128xf32>
    %54 = arith.select %49, %52, %53 : vector<4x128xi1>, vector<4x128xf32>
    %cst_18 = arith.constant 3.000000e+00 : f32
    %55 = vector.broadcast %cst_18 : f32 to vector<4x128xf32>
    %56 = arith.cmpf oeq, %32, %55 : vector<4x128xf32>
    %57 = vector.extract_strided_slice %30 {offsets = [0, 3], sizes = [4, 1], strides = [1, 1]} : vector<4x6xf32> to vector<4x1xf32>
    %cst_19 = arith.constant 0.000000e+00 : f32
    %58 = vector.shape_cast %57 : vector<4x1xf32> to vector<4x1xf32>
    %59 = vector.broadcast %58 : vector<4x1xf32> to vector<4x128xf32>
    %60 = vector.broadcast %cst_19 : f32 to vector<4x128xf32>
    %61 = arith.select %56, %59, %60 : vector<4x128xi1>, vector<4x128xf32>
    %62 = arith.addf %54, %61 : vector<4x128xf32>
    %63 = arith.addf %47, %62 : vector<4x128xf32>
    %cst_20 = arith.constant 4.000000e+00 : f32
    %64 = vector.broadcast %cst_20 : f32 to vector<4x128xf32>
    %65 = arith.cmpf oeq, %32, %64 : vector<4x128xf32>
    %66 = vector.extract_strided_slice %30 {offsets = [0, 4], sizes = [4, 1], strides = [1, 1]} : vector<4x6xf32> to vector<4x1xf32>
    %cst_21 = arith.constant 0.000000e+00 : f32
    %67 = vector.shape_cast %66 : vector<4x1xf32> to vector<4x1xf32>
    %68 = vector.broadcast %67 : vector<4x1xf32> to vector<4x128xf32>
    %69 = vector.broadcast %cst_21 : f32 to vector<4x128xf32>
    %70 = arith.select %65, %68, %69 : vector<4x128xi1>, vector<4x128xf32>
    %cst_22 = arith.constant 5.000000e+00 : f32
    %71 = vector.broadcast %cst_22 : f32 to vector<4x128xf32>
    %72 = arith.cmpf oeq, %32, %71 : vector<4x128xf32>
    %73 = vector.extract_strided_slice %30 {offsets = [0, 5], sizes = [4, 1], strides = [1, 1]} : vector<4x6xf32> to vector<4x1xf32>
    %cst_23 = arith.constant 0.000000e+00 : f32
    %74 = vector.shape_cast %73 : vector<4x1xf32> to vector<4x1xf32>
    %75 = vector.broadcast %74 : vector<4x1xf32> to vector<4x128xf32>
    %76 = vector.broadcast %cst_23 : f32 to vector<4x128xf32>
    %77 = arith.select %72, %75, %76 : vector<4x128xi1>, vector<4x128xf32>
    %78 = arith.addf %70, %77 : vector<4x128xf32>
    %79 = arith.addf %63, %78 : vector<4x128xf32>
    %80 = arith.addf %29, %79 : vector<4x128xf32>
    %c0_24 = arith.constant 0 : index
    %c0_25 = arith.constant 0 : index
    %81 = vector.load %arg6[%c0_24, %c0_25] : memref<4x128xf32, #tpu.memory_space<vmem>>, vector<4x128xf32>
    tpu.vector_store %arg6[%c0_24, %c0_25], %80 {strides = array<i32>} : memref<4x128xf32, #tpu.memory_space<vmem>>, vector<4x128xf32>,
    return
  }
  func.func @transform_0(%arg0: i32) -> (i32, i32) {
    %c0_i32 = arith.constant 0 : i32
    %c0_i32_0 = arith.constant 0 : i32
    return %c0_i32, %arg0 : i32, i32
  }
  func.func @transform_1(%arg0: i32) -> (i32, i32) {
    %c0_i32 = arith.constant 0 : i32
    %c0_i32_0 = arith.constant 0 : i32
    %c0_i32_1 = arith.constant 0 : i32
    return %c0_i32, %c0_i32_0 : i32, i32
  }
  func.func @transform_2(%arg0: i32) -> (i32, i32) {
    %c0_i32 = arith.constant 0 : i32
    %c0_i32_0 = arith.constant 0 : i32
    %c0_i32_1 = arith.constant 0 : i32
    return %c0_i32, %c0_i32_0 : i32, i32
  }
  func.func @transform_3(%arg0: i32) -> (i32, i32) {
    %c0_i32 = arith.constant 0 : i32
    %c0_i32_0 = arith.constant 0 : i32
    %c0_i32_1 = arith.constant 0 : i32
    return %c0_i32, %c0_i32_0 : i32, i32
  }
  func.func @transform_4(%arg0: i32) -> (i32, i32) {
    %c0_i32 = arith.constant 0 : i32
    %c0_i32_0 = arith.constant 0 : i32
    %c0_i32_1 = arith.constant 0 : i32
    return %c0_i32, %c0_i32_0 : i32, i32
  }
  func.func @transform_5(%arg0: i32) -> (i32, i32) {
    %c0_i32 = arith.constant 0 : i32
    %c0_i32_0 = arith.constant 0 : i32
    return %c0_i32, %arg0 : i32, i32
  }
}

</mosaic_0001>

<bundles_post_ra>
// kernel: _lambda_.1
= control target key start
LH: loop header
LB: loop body
LE: loop exit
PB: predicated region body
PF: predicated region fallthrough
CT: control target
= control target key end

     0   :  { %s576_s18 = smov 0   ;;  %s639_s0 = inlined_call_operand.vmem [shape: f32[3,256], index: 0, kind: input, shape index: {}]   ;;  %s640_s1 = inlined_call_operand.vmem [shape: f32[32,4], index: 1, kind: input, shape index: {}]   ;;  %s641_s2 = inlined_call_operand.vmem [shape: bf16[32,32], index: 2, kind: input, shape index: {}]   ;;  %s642_s3 = inlined_call_operand.vmem [shape: bf16[4,32], index: 3, kind: input, shape index: {}]   ;;  %s643_s4 = inlined_call_operand.vmem [shape: f32[4,6], index: 4, kind: input, shape index: {}]   ;;  %s644_s5 = inlined_call_operand.vmem [shape: f32[4,256], index: 5, kind: output, shape index: {}]  }
   0x1 LB: > { %s479_s19 = sadd.s32 4294967295, %s538_s18   ;;  %p483_p0 = scmp.ge.s32.totalorder %s538_s18, 1  ;;  %s538_s18 = sphi %s576_s18, %s15_s18  }
   0x2   : > { %p186_p1 = scmp.lt.s32.totalorder %s538_s18, 3 }
   0x4   : > { %p187_p2 = pnand %p483_p0, %p186_p1 }
   0x5   : > { %p212_p3 = scmp.lt.s32.totalorder (!%p187_p2), %s479_s19, 1 }
   0x6   : > { %190 = sbr.rel (%p187_p2) target bundleno = 453 (0x1c5), region = 40 }
   0xb   : > { %v224_v0 = vld [vmem:[%s640_s1 + $0x10] sm:$0xff]  ;;  %v540_v1 = vmov 1   ;;  %v541_v2 = vmov 0   ;;  %v222_v3 = vld [vmem:[%s640_s1] sm:$0xff]  ;;  %v225_v4 = vld [vmem:[%s640_s1 + $0x18] sm:$0xff]  ;;  %v542_v6 = vmov 2  }
   0xc   : > { %518 = vset.pattern.permute.xlu1 %v540_v1  ;;  %517 = vset.pattern.permute.xlu0 %v541_v2  ;;  %v223_v5 = vld [vmem:[%s640_s1 + $0x8] sm:$0xff]  ;;  %s646_s19 = smov (!%p212_p3, %s479_s19), 1  ;;  %v543_v13 = vmov 3   ;;  %v499_v46 = vld [vmem:[%s641_s2] sm:$0xff]  ;;  %vm332_vm0 = vcmask 261120   ;;  %v544_v48 = vmov 5  }
   0xd   : > { %260 = vperm.xlu1 %518, %v224_v0   ;;  %238 = vperm.xlu0 %517, %v224_v0   ;;  %s484_s28 = sshll.u32 %s646_s19, 2  ;;  %v500_v45 = vld [vmem:[%s641_s2 + $0x8] sm:$0xff]  ;;  %v365_v47 = vld [vmem:[%s643_s4] sm:$0xf]  ;;  %v545_v49 = vmov 4  }
   0xe   : > { %519 = vset.pattern.permute.xlu2 %v541_v2  ;;  %s215_s6 = scalar_lea.vmem %s639_s0, %s484_s28  ;;  %s219_s17 = scalar_lea.vmem %s644_s5, %s484_s28 }
   0xf   : > { %228 = vperm.xlu2 %519, %v222_v3   ;;  %v610_v14 = vld [vmem:[%s215_s6] sm:$0x7] }
  0x10   : > { %v246_v15 = vperm.slane %v610_v14, 0  ;;  %v267_v16 = vperm.slane %v610_v14, 1 }
  0x15   : > { %264 = vperm.xlu1 %518, %v225_v4   ;;  %243 = vperm.xlu0 %517, %v225_v4  }
  0x17   : > { %233 = vperm.xlu2 %519, %v223_v5  }
  0x1d   : > { %520 = vset.pattern.permute.xlu0 %v540_v1  ;;  %256 = vperm.xlu1 %518, %v223_v5  }
  0x1e   : > { %252 = vperm.xlu0 %520, %v222_v3  }
  0x1f   : > { %521 = vset.pattern.permute.xlu2 %v542_v6 }
  0x20   : > { %285 = vperm.xlu2 %521, %v224_v0  }
  0x25   : > { %522 = vset.pattern.permute.xlu1 %v542_v6 }
  0x26   : > { %289 = vperm.xlu1 %522, %v225_v4   ;;  %523 = vset.pattern.permute.xlu0 %v542_v6 }
  0x27   : > { %281 = vperm.xlu0 %523, %v223_v5  }
  0x28   : > { %277 = vperm.xlu2 %521, %v222_v3  }
  0x2e   : > { %524 = vset.pattern.permute.xlu1 %v543_v13 }
  0x2f   : > { %526 = vset.pattern.permute.xlu0 %v541_v2  ;;  %315 = vperm.xlu1 %524, %v224_v0  }
  0x30   : > { %525 = vset.pattern.permute.xlu2 %v543_v13  ;;  %370 = vperm.xlu0 %526, %v365_v47  }
  0x31   : > { %319 = vperm.xlu2 %525, %v225_v4   ;;  %v362_v4 = vld [vmem:[%s642_s3] sm:$0x3] }
  0x37   : > { %307 = vperm.xlu1 %524, %v222_v3  }
  0x38   : > { %531 = vset.pattern.permute.xlu0 %v544_v48 }
  0x39   : > { %311 = vperm.xlu2 %525, %v223_v5   ;;  %403 = vperm.xlu0 %531, %v365_v47  }
  0x3f   : > { %527 = vset.pattern.permute.xlu1 %v540_v1 }
  0x40   : > { %376 = vperm.xlu1 %527, %v365_v47  }
  0x41   : > { %528 = vset.pattern.permute.xlu2 %v542_v6 }
  0x42   : > { %383 = vperm.xlu2 %528, %v365_v47  }
  0x48   : > { %529 = vset.pattern.permute.xlu1 %v543_v13 }
  0x49   : > { %389 = vperm.xlu1 %529, %v365_v47  }
  0x4a   : > { %530 = vset.pattern.permute.xlu2 %v545_v49 }
  0x4b   : > { %397 = vperm.xlu2 %530, %v365_v47  }
  0x69   : > { %v229_v7 = vpop.permute.xlu2 %228 }
  0x6a   : > { %v247_v27 = vmul.f32 %v246_v15, %v229_v7 }
  0x71   : > { %v234_v10 = vpop.permute.xlu2 %233 }
  0x72   : > { %v248_v28 = vmul.f32 %v246_v15, %v234_v10 }
  0x7a   : > { %v286_v20 = vpop.permute.xlu2 %285 }
  0x7f   : > { %v261_v8 = vpop.permute.xlu1 %260  ;;  %v239_v9 = vpop.permute.xlu0 %238 }
  0x80   : > { %v270_v17 = vmul.f32 %v267_v16, %v261_v8  ;;  %v249_v18 = vmul.f32 %v246_v15, %v239_v9  ;;  %v366_v8 = vperm.slane %v610_v14, 2 }
  0x82   : > { %v274_v22 = vadd.f32 %v270_v17, %v249_v18  ;;  %v278_v32 = vpop.permute.xlu2 %277  ;;  %vm374_vm1 = vcmp.eq.f32.partialorder %v366_v8, 1.0  ;;  %vm367_vm2 = vcmp.eq.f32.partialorder %v366_v8, 0.0  ;;  %vm381_vm3 = vcmp.eq.f32.partialorder %v366_v8, 2.0 }
  0x83   : > { %vm387_vm4 = vcmp.eq.f32.partialorder %v366_v8, 3.0  ;;  %vm401_vm5 = vcmp.eq.f32.partialorder %v366_v8, 5.0  ;;  %vm395_vm6 = vcmp.eq.f32.partialorder %v366_v8, 4.0 }
  0x84   : > { %v294_v29 = vadd.f32 %v286_v20, %v274_v22 }
  0x86   : > { %v298_v38 = vmax.f32 %v294_v29, 0.0 }
  0x87   : > { %v265_v11 = vpop.permute.xlu1 %264  ;;  %v244_v12 = vpop.permute.xlu0 %243 }
  0x88   : > { %v271_v23 = vmul.f32 %v267_v16, %v265_v11  ;;  %v250_v24 = vmul.f32 %v246_v15, %v244_v12 }
  0x8a   : > { %v275_v31 = vadd.f32 %v271_v23, %v250_v24 }
  0x8b   : > { %v320_v51 = vpop.permute.xlu2 %319 }
  0x8f   : > { %v257_v19 = vpop.permute.xlu1 %256 }
  0x90   : > { %v253_v21 = vpop.permute.xlu0 %252  ;;  %v269_v26 = vmul.f32 %v267_v16, %v257_v19 }
  0x91   : > { %v268_v25 = vmul.f32 %v267_v16, %v253_v21 }
  0x92   : > { %v273_v34 = vadd.f32 %v269_v26, %v248_v28 }
  0x93   : > { %v272_v30 = vadd.f32 %v268_v25, %v247_v27  ;;  %v312_v55 = vpop.permute.xlu2 %311 }
  0x95   : > { %v292_v39 = vadd.f32 %v278_v32, %v272_v30 }
  0x97   : > { %v296_v43 = vmax.f32 %v292_v39, 0.0 }
  0x98   : > { %v290_v33 = vpop.permute.xlu1 %289 }
  0x99   : > { %v295_v35 = vadd.f32 %v290_v33, %v275_v31  ;;  %v282_v36 = vpop.permute.xlu0 %281 }
  0x9a   : > { %v293_v37 = vadd.f32 %v282_v36, %v273_v34 }
  0x9b   : > { %v299_v40 = vmax.f32 %v295_v35, 0.0 }
  0x9c   : > { %v297_v41 = vmax.f32 %v293_v37, 0.0  ;;  %v384_v7 = vpop.permute.xlu2 %383 }
  0x9d   : > { %v305_v42 = vpack.c.bf16 %v299_v40, %v298_v38  ;;  %v386_v12 = vsel %vm381_vm3, %v384_v7, 0.0 }
  0x9e   : > { %v304_v44 = vpack.c.bf16 %v297_v41, %v296_v43 }
  0x9f   : > { %345 = vmatpush.bf16.msra.mxu0 %v305_v42  ;;  %501 = vmatpush.bf16.msra.mxu2 %v305_v42 }
  0xa1   : > { %v316_v50 = vpop.permute.xlu1 %315 }
  0xa2   : > { %v371_v6 = vpop.permute.xlu0 %370 }
  0xa3   : > { %346 = vmatpush.bf16.msra.mxu0 %v304_v44  ;;  %502 = vmatpush.bf16.msra.mxu2 %v304_v44  ;;  %v373_v11 = vsel %vm367_vm2, %v371_v6, 0.0 }
  0xa5   : > { %v398_v16 = vpop.permute.xlu2 %397 }
  0xa6   : > { %495 = vmatmul.msk.bf16.vlgmr.msra.gmra.mxu2 %vm332_vm0, %v500_v45  ;;  %494 = vmatmul.msk.bf16.vlgmr.msra.gmra.mxu0 %vm332_vm0, %v499_v46  ;;  %v400_v20 = vsel %vm395_vm6, %v398_v16, 0.0 }
  0xa9   : > { %v308_v54 = vpop.permute.xlu1 %307 }
  0xab   : > { %v404_v15 = vpop.permute.xlu0 %403 }
  0xac   : > { %v406_v19 = vsel %vm401_vm5, %v404_v15, 0.0 }
  0xad   : > { %v407_v14 = vadd.f32 %v406_v19, %v400_v20 }
  0xb2   : > { %v377_v5 = vpop.permute.xlu1 %376 }
  0xb3   : > { %v379_v10 = vsel %vm374_vm1, %v377_v5, 0.0 }
  0xb4   : > { %v380_v17 = vadd.f32 %v379_v10, %v373_v11 }
  0xbb   : > { %v390_v9 = vpop.permute.xlu1 %389 }
  0xbc   : > { %v392_v13 = vsel %vm387_vm4, %v390_v9, 0.0 }
  0xbd   : > { %v393_v18 = vadd.f32 %v392_v13, %v386_v12 }
  0xbf   : > { %v394_v21 = vadd.f32 %v393_v18, %v380_v17 }
  0xc1   : > { %v408_v22 = vadd.f32 %v407_v14, %v394_v21 }
 0x123   : > { %v348_v52 = vpop.f32.mrf.mxu0 }
 0x124   : > { %v349_v59 = vadd.f32 %v348_v52, %v308_v54 }
 0x126   : > { %v358_v0 = vmax.f32 %v349_v59, 0.0 }
 0x129   : > { %v353_v53 = vpop.f32.mrf.mxu2 }
 0x12a   : > { %v354_v57 = vadd.f32 %v353_v53, %v316_v50 }
 0x12b   : > { %v350_v56 = vpop.f32.mrf.mxu0 }
 0x12c   : > { %v351_v60 = vadd.f32 %v350_v56, %v312_v55  ;;  %v360_v62 = vmax.f32 %v354_v57, 0.0 }
 0x12e   : > { %v359_v1 = vmax.f32 %v351_v60, 0.0 }
 0x130   : > { %v363_v3 = vpack.c.bf16 %v359_v1, %v358_v0 }
 0x131   : > { %v355_v58 = vpop.f32.mrf.mxu2 }
 0x132   : > { %v356_v61 = vadd.f32 %v355_v58, %v320_v51 }
 0x134   : > { %v361_v63 = vmax.f32 %v356_v61, 0.0 }
 0x136   : > { %v364_v2 = vpack.c.bf16 %v361_v63, %v360_v62 }
 0x138   : > { %418 = vmatpush.bf16.msra.mxu1 %v364_v2 }
 0x13c   : > { %419 = vmatpush.bf16.msra.mxu1 %v363_v3 }
 0x13f   : > { %496 = vmatmul.msk.bf16.vlgmr.msra.gmra.mxu1 %vm332_vm0, %v362_v4 }
 0x1bc   : > { %v421_v23 = vpop.f32.mrf.mxu1 }
 0x1bd   : > { %v422_v24 = vadd.f32 %v421_v23, %v408_v22 }
 0x1bf   : > { %425 = vst [vmem:[%s219_s17] sm:$0xf] %v422_v24 }
 0x1c4   : > { %v423_v25 = vpop.f32.mrf.mxu1 }
 0x1c5 PF: > { %s15_s18 = sadd.s32 1, %s538_s18  }
 0x1c6   : > { %p12_p4 = scmp.ge.s32.totalorder %s15_s18, 4  }
 0x1c8   :  { %14 = sbr.rel (!%p12_p4) target bundleno = 1 (0x1), region = 70 }

</bundles_post_ra>
